<compile_context>
chip_gen: v7x
topology: tpu7x:2x2x1
jax: 0.10.0
libtpu: 0.0.40
codegen_flags: <defaults>
</compile_context>

<pallas_src>
import jax
import jax.numpy as jnp
from jax.experimental import pallas as pl
from jax.experimental.pallas import tpu as pltpu


# Sublane alignment covering both f32 (8) and packed bf16 (16) layouts.
SUBLANE = 16
LANE = 128


def _round_up(x, m):
    return ((x + m - 1) // m) * m


def _cdiv(a, b):
    return -(-a // b)


def actor_kernel(x_ref, w1_ref, b1_ref, w2_ref, b2_ref, w3_ref, b3_ref, o_ref):
    # fc1 + relu (f32 accumulation; relu in f32)
    h1 = jnp.dot(x_ref[...], w1_ref[...],
                 preferred_element_type=jnp.float32) + b1_ref[...]
    h1 = jnp.maximum(h1, 0.0)

    # fc2 + relu
    h2 = jnp.dot(h1.astype(w2_ref.dtype), w2_ref[...],
                 preferred_element_type=jnp.float32) + b2_ref[...]
    h2 = jnp.maximum(h2, 0.0)

    # fc3 -- output dim padded to lane width (128); padded weight columns are 0
    # and padded bias columns are -1e30, so their softmax contribution is
    # exactly exp(-huge) == 0.
    logits = jnp.dot(h2.astype(w3_ref.dtype), w3_ref[...],
                     preferred_element_type=jnp.float32) + b3_ref[...]

    # Numerically-stable softmax over the lane-dense (padded) last dim.
    # Exact normalization in f32 (mem-bound kernel: the divide is free and
    # keeps each row summing to 1 to output-dtype precision).
    m = jnp.max(logits, axis=-1, keepdims=True)
    e = jnp.exp(logits - m)
    denom = jnp.sum(e, axis=-1, keepdims=True)
    o_ref[...] = (e / denom).astype(o_ref.dtype)


def prepare_actor_params(params, *, use_bf16=True):
    """One-time prep (call at init, NOT per step): pad fc3 to 128 lanes and
    optionally cast weights to bf16 (biases stay f32)."""
    w1, b1 = params["w1"], params["b1"]
    w2, b2 = params["w2"], params["b2"]
    w3, b3 = params["w3"], params["b3"]

    n_actions = w3.shape[1]
    n_pad = _round_up(n_actions, LANE)
    w3p = jnp.pad(w3, ((0, 0), (0, n_pad - n_actions)))
    b3p = jnp.pad(b3, ((0, 0), (0, n_pad - n_actions)), constant_values=-1e30)

    wdtype = jnp.bfloat16 if use_bf16 else jnp.float32
    return {
        "w1": w1.astype(wdtype), "b1": b1.astype(jnp.float32),
        "w2": w2.astype(wdtype), "b2": b2.astype(jnp.float32),
        "w3": w3p.astype(wdtype), "b3": b3p.astype(jnp.float32),
        "n_actions": n_actions,
    }


def _choose_batch_tile(B, tm, min_grid_steps):
    tm_eff = min(tm, _round_up(B, SUBLANE))
    # v7x has 2 TensorCores: prefer >= min_grid_steps grid steps when the batch
    # allows it so the "parallel" batch axis gives both cores work.
    if min_grid_steps > 1 and B >= min_grid_steps * SUBLANE:
        per_step = _round_up(_cdiv(_round_up(B, SUBLANE), min_grid_steps), SUBLANE)
        tm_eff = min(tm_eff, per_step)
    b_pad = _round_up(B, tm_eff)
    return tm_eff, b_pad


def actor_forward(x, prep, *, tm=1024, out_dtype=jnp.bfloat16, min_grid_steps=2):
    """x: (B, state_dim) float32. prep: output of prepare_actor_params.

    Returns padded probabilities of shape (b_pad, 128), dtype `out_dtype`.
    Columns >= n_actions are exactly 0; rows >= B are padding (ignore them).
    No post-call slice is materialized (it would re-read the whole output).
    """
    w1, b1 = prep["w1"], prep["b1"]
    w2, b2 = prep["w2"], prep["b2"]
    w3, b3 = prep["w3"], prep["b3"]

    B, state_dim = x.shape
    units = w1.shape[1]
    n_pad = w3.shape[1]

    x = x.astype(w1.dtype)  # bf16 MXU inputs by default; f32 accumulation in-kernel

    tm_eff, b_pad = _choose_batch_tile(B, tm, min_grid_steps)
    if b_pad != B:
        # Zero rows: they run softmax over pure biases -- harmless, ignored.
        x = jnp.pad(x, ((0, b_pad - B), (0, 0)))

    grid = (b_pad // tm_eff,)
    keep = lambda i: (0, 0)  # constant block -> weights stay VMEM-resident

    in_itemsize = jnp.dtype(w1.dtype).itemsize
    out_itemsize = jnp.dtype(out_dtype).itemsize
    weight_elems = state_dim * units + units * units + units * n_pad
    cost = pl.CostEstimate(
        flops=2 * b_pad * weight_elems,
        transcendentals=b_pad * n_pad,
        bytes_accessed=(b_pad * state_dim * in_itemsize
                        + weight_elems * in_itemsize
                        + (2 * units + n_pad) * 4
                        + b_pad * n_pad * out_itemsize),
    )

    out = pl.pallas_call(
        actor_kernel,
        out_shape=jax.ShapeDtypeStruct((b_pad, n_pad), out_dtype),
        grid=grid,
        in_specs=[
            pl.BlockSpec((tm_eff, state_dim), lambda i: (i, 0)),  # x tile
            pl.BlockSpec((state_dim, units), keep),               # w1
            pl.BlockSpec((1, units), keep),                       # b1
            pl.BlockSpec((units, units), keep),                   # w2
            pl.BlockSpec((1, units), keep),                       # b2
            pl.BlockSpec((units, n_pad), keep),                   # w3 (lane-padded)
            pl.BlockSpec((1, n_pad), keep),                       # b3 (lane-padded)
        ],
        out_specs=pl.BlockSpec((tm_eff, n_pad), lambda i: (i, 0)),
        compiler_params=pltpu.CompilerParams(
            dimension_semantics=("parallel",),   # shard batch tiles over TCs
        ),
        cost_estimate=cost,
    )(x, w1, b1, w2, b2, w3, b3)

    return out


def init_actor_params(key, state_dim, n_actions, units):
    """Deterministic init mimicking nn.Linear's U(-1/sqrt(fan_in), +1/sqrt(fan_in))."""
    ks = jax.random.split(key, 6)

    def linear(kw, kb, fan_in, fan_out):
        bound = 1.0 / jnp.sqrt(fan_in)
        w = jax.random.uniform(kw, (fan_in, fan_out), jnp.float32, -bound, bound)
        b = jax.random.uniform(kb, (1, fan_out), jnp.float32, -bound, bound)
        return w, b

    w1, b1 = linear(ks[0], ks[1], state_dim, units)
    w2, b2 = linear(ks[2], ks[3], units, units)
    w3, b3 = linear(ks[4], ks[5], units, n_actions)
    return {"w1": w1, "b1": b1, "w2": w2, "b2": b2, "w3": w3, "b3": b3}


def actor_reference(x, params):
    h1 = jnp.maximum(x @ params["w1"] + params["b1"], 0.0)
    h2 = jnp.maximum(h1 @ params["w2"] + params["b2"], 0.0)
    logits = h2 @ params["w3"] + params["b3"]
    return jax.nn.softmax(logits, axis=-1)


if __name__ == "__main__":
    state_dim, n_actions, units = 16, 6, 32
    batch = 8

    key = jax.random.PRNGKey(0)
    kx, kp = jax.random.split(key)
    x = jax.random.normal(kx, (batch, state_dim), dtype=jnp.float32)
    params = init_actor_params(kp, state_dim, n_actions, units)

    # ---- exact path: f32 weights/inputs, f32 output, single-tile grid ----
    prep_f32 = prepare_actor_params(params, use_bf16=False)
    out = jax.block_until_ready(
        actor_forward(x, prep_f32, out_dtype=jnp.float32))
    ref = actor_reference(x, params)
    assert out.shape[1] == 128 and out.shape[0] >= batch
    probs = out[:batch, :n_actions]              # test-only slice for comparison
    assert jnp.allclose(probs, ref, atol=2e-3, rtol=2e-3)
    assert jnp.allclose(jnp.sum(probs, axis=-1), 1.0, atol=1e-3)
    assert jnp.all(jnp.abs(out[:batch, n_actions:]) < 1e-6)   # padded cols ~exactly 0

    # ---- fast path: bf16 weights/inputs, bf16 output, multi-step grid ----
    prep_bf16 = prepare_actor_params(params, use_bf16=True)
    xb = jax.random.normal(jax.random.PRNGKey(1), (1000, state_dim), dtype=jnp.float32)
    outb = jax.block_until_ready(actor_forward(xb, prep_bf16, tm=1024))
    refb = actor_reference(xb, params)
    assert outb.dtype == jnp.bfloat16
    assert outb.shape[1] == 128 and outb.shape[0] >= 1000
    pb = outb[:1000, :n_actions].astype(jnp.float32)
    assert jnp.allclose(pb, refb, atol=5e-2)
    assert jnp.allclose(jnp.sum(pb, axis=-1), 1.0, atol=2e-2)
    assert jnp.all(jnp.abs(outb[:1000, n_actions:].astype(jnp.float32)) < 1e-6)

    print("KERNEL_OK")
</pallas_src>

<mosaic_0001>
module attributes {stable_mosaic.version = 11 : i64} {
  func.func @actor_kernel(%arg0: i32, %arg1: memref<16x16xf32, #tpu.memory_space<vmem>>, %arg2: memref<16x32xf32, #tpu.memory_space<vmem>>, %arg3: memref<1x32xf32, #tpu.memory_space<vmem>>, %arg4: memref<32x32xf32, #tpu.memory_space<vmem>>, %arg5: memref<1x32xf32, #tpu.memory_space<vmem>>, %arg6: memref<32x128xf32, #tpu.memory_space<vmem>>, %arg7: memref<1x128xf32, #tpu.memory_space<vmem>>, %arg8: memref<16x128xf32, #tpu.memory_space<vmem>>) attributes {dimension_semantics = [#tpu.dimension_semantics<parallel>], iteration_bounds = array<i64: 1>, scalar_prefetch = 0 : i64, scratch_operands = 0 : i64, tpu.core_type = #tpu.core_type<tc>, window_params = [{transform_indices = @transform_0, window_bounds = array<i64: 16, 16>}, {pipeline_mode = #tpu.pipeline_mode<synchronous>, transform_indices = @transform_1, window_bounds = array<i64: 16, 32>}, {pipeline_mode = #tpu.pipeline_mode<synchronous>, transform_indices = @transform_2, window_bounds = array<i64: 1, 32>}, {pipeline_mode = #tpu.pipeline_mode<synchronous>, transform_indices = @transform_3, window_bounds = array<i64: 32, 32>}, {pipeline_mode = #tpu.pipeline_mode<synchronous>, transform_indices = @transform_4, window_bounds = array<i64: 1, 32>}, {pipeline_mode = #tpu.pipeline_mode<synchronous>, transform_indices = @transform_5, window_bounds = array<i64: 32, 128>}, {pipeline_mode = #tpu.pipeline_mode<synchronous>, transform_indices = @transform_6, window_bounds = array<i64: 1, 128>}, {transform_indices = @transform_7, window_bounds = array<i64: 16, 128>}]} {
    %c0 = arith.constant 0 : index
    %c0_0 = arith.constant 0 : index
    %0 = vector.load %arg1[%c0, %c0_0] : memref<16x16xf32, #tpu.memory_space<vmem>>, vector<16x16xf32>
    %c0_1 = arith.constant 0 : index
    %c0_2 = arith.constant 0 : index
    %1 = vector.load %arg2[%c0_1, %c0_2] : memref<16x32xf32, #tpu.memory_space<vmem>>, vector<16x32xf32>
    %cst = arith.constant dense<0.000000e+00> : vector<16x32xf32>
    %2 = tpu.matmul %0, %1, %cst {dimension_numbers = #tpu.dot_dimension_numbers<[1], [0], [0], [1], [0, 0, 1, 1], [], []>} : vector<16x16xf32>, vector<16x32xf32>, vector<16x32xf32> -> vector<16x32xf32>
    %c0_3 = arith.constant 0 : index
    %c0_4 = arith.constant 0 : index
    %3 = vector.load %arg3[%c0_3, %c0_4] : memref<1x32xf32, #tpu.memory_space<vmem>>, vector<1x32xf32>
    %4 = vector.broadcast %3 : vector<1x32xf32> to vector<16x32xf32>
    %5 = arith.addf %2, %4 : vector<16x32xf32>
    %cst_5 = arith.constant 0.000000e+00 : f32
    %6 = vector.broadcast %cst_5 : f32 to vector<16x32xf32>
    %7 = arith.maximumf %5, %6 : vector<16x32xf32>
    %c0_6 = arith.constant 0 : index
    %c0_7 = arith.constant 0 : index
    %8 = vector.load %arg4[%c0_6, %c0_7] : memref<32x32xf32, #tpu.memory_space<vmem>>, vector<32x32xf32>
    %cst_8 = arith.constant dense<0.000000e+00> : vector<16x32xf32>
    %9 = tpu.matmul %7, %8, %cst_8 {dimension_numbers = #tpu.dot_dimension_numbers<[1], [0], [0], [1], [0, 0, 1, 1], [], []>} : vector<16x32xf32>, vector<32x32xf32>, vector<16x32xf32> -> vector<16x32xf32>
    %c0_9 = arith.constant 0 : index
    %c0_10 = arith.constant 0 : index
    %10 = vector.load %arg5[%c0_9, %c0_10] : memref<1x32xf32, #tpu.memory_space<vmem>>, vector<1x32xf32>
    %11 = vector.broadcast %10 : vector<1x32xf32> to vector<16x32xf32>
    %12 = arith.addf %9, %11 : vector<16x32xf32>
    %cst_11 = arith.constant 0.000000e+00 : f32
    %13 = vector.broadcast %cst_11 : f32 to vector<16x32xf32>
    %14 = arith.maximumf %12, %13 : vector<16x32xf32>
    %c0_12 = arith.constant 0 : index
    %c0_13 = arith.constant 0 : index
    %15 = vector.load %arg6[%c0_12, %c0_13] : memref<32x128xf32, #tpu.memory_space<vmem>>, vector<32x128xf32>
    %cst_14 = arith.constant dense<0.000000e+00> : vector<16x128xf32>
    %16 = tpu.matmul %14, %15, %cst_14 {dimension_numbers = #tpu.dot_dimension_numbers<[1], [0], [0], [1], [0, 0, 1, 1], [], []>} : vector<16x32xf32>, vector<32x128xf32>, vector<16x128xf32> -> vector<16x128xf32>
    %c0_15 = arith.constant 0 : index
    %c0_16 = arith.constant 0 : index
    %17 = vector.load %arg7[%c0_15, %c0_16] : memref<1x128xf32, #tpu.memory_space<vmem>>, vector<1x128xf32>
    %18 = vector.broadcast %17 : vector<1x128xf32> to vector<16x128xf32>
    %19 = arith.addf %16, %18 : vector<16x128xf32>
    %cst_17 = arith.constant dense<0xFF800000> : vector<16xf32>
    %20 = vector.multi_reduction <maximumf>, %19, %cst_17 [1] : vector<16x128xf32> to vector<16xf32>
    %21 = vector.shape_cast %20 : vector<16xf32> to vector<16x1xf32>
    %22 = vector.broadcast %21 : vector<16x1xf32> to vector<16x128xf32>
    %23 = arith.subf %19, %22 : vector<16x128xf32>
    %24 = math.exp %23 : vector<16x128xf32>
    %cst_18 = arith.constant dense<0.000000e+00> : vector<16xf32>
    %25 = vector.multi_reduction <add>, %24, %cst_18 [1] : vector<16x128xf32> to vector<16xf32>
    %26 = vector.shape_cast %25 : vector<16xf32> to vector<16x1xf32>
    %27 = vector.broadcast %26 : vector<16x1xf32> to vector<16x128xf32>
    %28 = arith.divf %24, %27 : vector<16x128xf32>
    %c0_19 = arith.constant 0 : index
    %c0_20 = arith.constant 0 : index
    %29 = vector.load %arg8[%c0_19, %c0_20] : memref<16x128xf32, #tpu.memory_space<vmem>>, vector<16x128xf32>
    tpu.vector_store %arg8[%c0_19, %c0_20], %28 {strides = array<i32>} : memref<16x128xf32, #tpu.memory_space<vmem>>, vector<16x128xf32>,
    return
  }
  func.func @transform_0(%arg0: i32) -> (i32, i32) {
    %c0_i32 = arith.constant 0 : i32
    %c0_i32_0 = arith.constant 0 : i32
    return %arg0, %c0_i32 : i32, i32
  }
  func.func @transform_1(%arg0: i32) -> (i32, i32) {
    %c0_i32 = arith.constant 0 : i32
    %c0_i32_0 = arith.constant 0 : i32
    %c0_i32_1 = arith.constant 0 : i32
    return %c0_i32, %c0_i32_0 : i32, i32
  }
  func.func @transform_2(%arg0: i32) -> (i32, i32) {
    %c0_i32 = arith.constant 0 : i32
    %c0_i32_0 = arith.constant 0 : i32
    %c0_i32_1 = arith.constant 0 : i32
    return %c0_i32, %c0_i32_0 : i32, i32
  }
  func.func @transform_3(%arg0: i32) -> (i32, i32) {
    %c0_i32 = arith.constant 0 : i32
    %c0_i32_0 = arith.constant 0 : i32
    %c0_i32_1 = arith.constant 0 : i32
    return %c0_i32, %c0_i32_0 : i32, i32
  }
  func.func @transform_4(%arg0: i32) -> (i32, i32) {
    %c0_i32 = arith.constant 0 : i32
    %c0_i32_0 = arith.constant 0 : i32
    %c0_i32_1 = arith.constant 0 : i32
    return %c0_i32, %c0_i32_0 : i32, i32
  }
  func.func @transform_5(%arg0: i32) -> (i32, i32) {
    %c0_i32 = arith.constant 0 : i32
    %c0_i32_0 = arith.constant 0 : i32
    %c0_i32_1 = arith.constant 0 : i32
    return %c0_i32, %c0_i32_0 : i32, i32
  }
  func.func @transform_6(%arg0: i32) -> (i32, i32) {
    %c0_i32 = arith.constant 0 : i32
    %c0_i32_0 = arith.constant 0 : i32
    %c0_i32_1 = arith.constant 0 : i32
    return %c0_i32, %c0_i32_0 : i32, i32
  }
  func.func @transform_7(%arg0: i32) -> (i32, i32) {
    %c0_i32 = arith.constant 0 : i32
    %c0_i32_0 = arith.constant 0 : i32
    return %arg0, %c0_i32 : i32, i32
  }
}

</mosaic_0001>

<bundles_post_ra>
// kernel: tpu_custom_call.1
= control target key start
LH: loop header
LB: loop body
LE: loop exit
PB: predicated region body
PF: predicated region fallthrough
CT: control target
= control target key end

     0   :  { %12 = vsyncpa [#allocation3], 0  ;;  %s759_s0 = inlined_call_operand.hbm [shape: f32[16,16], index: 0, kind: input, shape index: {}]   ;;  %s760_s1 = inlined_call_operand.hbm [shape: f32[16,32], index: 1, kind: input, shape index: {}]   ;;  %s761_s2 = inlined_call_operand.vmem [shape: f32[1,32], index: 2, kind: input, shape index: {}]   ;;  %s762_s3 = inlined_call_operand.hbm [shape: f32[32,32], index: 3, kind: input, shape index: {}]   ;;  %s763_s4 = inlined_call_operand.vmem [shape: f32[1,32], index: 4, kind: input, shape index: {}]   ;;  %s764_s5 = inlined_call_operand.hbm [shape: f32[32,128], index: 5, kind: input, shape index: {}]   ;;  %s765_s6 = inlined_call_operand.vmem [shape: f32[1,128], index: 6, kind: input, shape index: {}]   ;;  %s766_s7 = inlined_call_operand.hbm [shape: f32[16,128], index: 7, kind: output, shape index: {}]  }
   0x1   :  { %13 = vsyncpa [#allocation6], 0 }
   0x2   :  { %14 = vsyncpa [#allocation9], 0 }
   0x3   :  { %15 = vsyncpa [#allocation4], 0  ;;  %s610_s24 = smov [#allocation5]   ;;  %s611_s26 = smov [#allocation2]  }
   0x4   :  { %s33_s25 = sshll.u32 %s610_s24, 4  ;;  %s21_s27 = sshll.u32 %s611_s26, 4  ;;  %s34_s25 = int_to_ptr.vmem [resolvable:$true] %s33_s25  ;;  %s657_s27 = int_to_ptr.vmem [resolvable:$true] %s21_s27 }
   0x5   :  { %s492_s30 = scalar_lea.hbm %s760_s1, 256 }
   0x6   :  { %p493_p0 = scmp.ne.s32.totalorder %s760_s1, %s492_s30  ;;  %p496_p1 = scmp.lt.u32.totalorder %s492_s30, %s760_s1 }
   0x8   :  { %p498_p2 = pnand %p496_p1, %p493_p0 }
   0xa   :  { %501 = shalt.err (!%p498_p2)
}
   0xb   :  { %s502_s12 = scalar_lea.vmem %s34_s25, 256  ;;  %p507_p4 = scmp.lt.s32.totalorder %s34_s25, %s34_s25 }
   0xc   :  { %p503_p3 = scmp.ne.s32.totalorder %s34_s25, %s502_s12  ;;  %p508_p5 = scmp.lt.s32.totalorder %s502_s12, %s502_s12 }
   0xe   :  { %p509_p6 = por %p508_p5, %p507_p4 }
  0x10   :  { %p510_p7 = pnand %p509_p6, %p503_p3 }
  0x12   :  { %513 = shalt.err (!%p510_p7)
}
  0x13   :  { %s612_s13 = smov 128   ;;  %s613_s14 = smov 8  }
  0x14   :  { %39 = dma.hbm_to_vmem [thread:$0]  %s760_s1, 256, %s34_s25, [#allocation6], %s612_s13, %s612_s13, %s613_s14  }
  0x15   :  { %s514_s19 = scalar_lea.hbm %s759_s0, 256 }
  0x16   :  { %p515_p8 = scmp.ne.s32.totalorder %s759_s0, %s514_s19  ;;  %p518_p9 = scmp.lt.u32.totalorder %s514_s19, %s759_s0 }
  0x18   :  { %p520_p10 = pnand %p518_p9, %p515_p8 }
  0x1a   :  { %523 = shalt.err (!%p520_p10)
}
  0x1b   :  { %s524_s24 = scalar_lea.vmem %s657_s27, 256  ;;  %p529_p12 = scmp.lt.s32.totalorder %s657_s27, %s657_s27 }
  0x1c   :  { %p525_p11 = scmp.ne.s32.totalorder %s657_s27, %s524_s24  ;;  %p530_p13 = scmp.lt.s32.totalorder %s524_s24, %s524_s24 }
  0x1e   :  { %p531_p0 = por %p530_p13, %p529_p12 }
  0x20   :  { %p532_p1 = pnand %p531_p0, %p525_p11 }
  0x22   :  { %535 = shalt.err (!%p532_p1)
}
  0x23   :  { %27 = dma.hbm_to_vmem [thread:$0]  %s759_s0, 256, %s657_s27, [#allocation3], %s612_s13, %s612_s13, %s613_s14  }
  0x24   :  { %s614_s26 = smov [#allocation7]   ;;  %s615_s29 = smov [#allocation8]  }
  0x25   :  { %s47_s28 = sshll.u32 %s614_s26, 4  ;;  %s61_s30 = sshll.u32 %s615_s29, 4  ;;  %s48_s28 = int_to_ptr.vmem [resolvable:$true] %s47_s28  ;;  %s694_s30 = int_to_ptr.vmem [resolvable:$true] %s61_s30 }
  0x26   :  { %s536_s10 = scalar_lea.hbm %s762_s3, 512 }
  0x27   :  { %p537_p2 = scmp.ne.s32.totalorder %s762_s3, %s536_s10  ;;  %p540_p3 = scmp.lt.u32.totalorder %s536_s10, %s762_s3 }
  0x29   :  { %p542_p4 = pnand %p540_p3, %p537_p2 }
  0x2b   :  { %545 = shalt.err (!%p542_p4)
}
  0x2c   :  { %s546_s0 = scalar_lea.vmem %s48_s28, 512  ;;  %p551_p6 = scmp.lt.s32.totalorder %s48_s28, %s48_s28 }
  0x2d   :  { %p547_p5 = scmp.ne.s32.totalorder %s48_s28, %s546_s0  ;;  %p552_p7 = scmp.lt.s32.totalorder %s546_s0, %s546_s0 }
  0x2f   :  { %p553_p8 = por %p552_p7, %p551_p6 }
  0x31   :  { %p554_p9 = pnand %p553_p8, %p547_p5 }
  0x33   :  { %557 = shalt.err (!%p554_p9)
}
  0x34   :  { %53 = dma.hbm_to_vmem [thread:$0]  %s762_s3, 512, %s48_s28, [#allocation6], %s612_s13, %s612_s13, %s613_s14  }
  0x35   :  { %s558_s20 = scalar_lea.hbm %s764_s5, 512 }
  0x36   :  { %p559_p10 = scmp.ne.s32.totalorder %s764_s5, %s558_s20  ;;  %p562_p11 = scmp.lt.u32.totalorder %s558_s20, %s764_s5 }
  0x38   :  { %p564_p12 = pnand %p562_p11, %p559_p10 }
  0x3a   :  { %567 = shalt.err (!%p564_p12)
}
  0x3b   :  { %s568_s1 = scalar_lea.vmem %s694_s30, 512  ;;  %p573_p0 = scmp.lt.s32.totalorder %s694_s30, %s694_s30 }
  0x3c   :  { %p569_p13 = scmp.ne.s32.totalorder %s694_s30, %s568_s1  ;;  %p574_p1 = scmp.lt.s32.totalorder %s568_s1, %s568_s1 }
  0x3e   :  { %p575_p2 = por %p574_p1, %p573_p0 }
  0x40   :  { %p576_p3 = pnand %p575_p2, %p569_p13 }
  0x42   :  { %579 = shalt.err (!%p576_p3)
}
  0x43   :  { %67 = dma.hbm_to_vmem [thread:$0]  %s764_s5, 512, %s694_s30, [#allocation9], %s612_s13, %s612_s13, %s613_s14  }
  0x44   :  { %602 = dma.done.wait [#allocation3], 256  }
  0x45   :  { %603 = vsyncadd [#allocation3], 4294967040 }
  0x46   :  { %604 = dma.done.wait [#allocation6], 768  }
  0x47   :  { %605 = vsyncadd [#allocation6], 4294966528 }
  0x48   :  { %606 = dma.done.wait [#allocation9], 512  }
  0x49   :  { %607 = vsyncadd [#allocation9], 4294966784  ;;  %vm93_vm0 = vcmask 130048   ;;  %v84_v0 = vld [vmem:[#allocation5] sm:$0xff]  ;;  %v85_v1 = vld [vmem:[#allocation5 + $0x8] sm:$0xff]  ;;  %vm188_vm1 = vcmask 261120  }
  0x4a   :  { %v82_v2 = vld [vmem:[#allocation2] sm:$0xff]  ;;  %v457_v3 = vpack.c.bf16 %v85_v1, %v84_v0  ;;  %v178_v5 = vld [vmem:[#allocation7 + $0x8] sm:$0xff]  ;;  %v179_v8 = vld [vmem:[#allocation7 + $0x10] sm:$0xff] }
  0x4b   :  { %432 = vmatprep.mubr.msk.f32.mxu0 %vm93_vm0, %v82_v2  ;;  %v177_v4 = vld [vmem:[#allocation7] sm:$0xff]  ;;  %v83_v7 = vld [vmem:[#allocation2 + $0x8] sm:$0xff]  ;;  %v180_v9 = vld [vmem:[#allocation7 + $0x18] sm:$0xff] }
  0x4c   :  { %v461_v6 = vpack.c.bf16 %v178_v5, %v177_v4  ;;  %458 = vmatprep.subr.bf16.mxu0 %v457_v3  ;;  %v465_v10 = vpack.c.bf16 %v180_v9, %v179_v8  ;;  %v272_v11 = vld [vmem:[#allocation8] sm:$0xff]  ;;  %v273_v12 = vld [vmem:[#allocation8 + $0x8] sm:$0xff]  ;;  %v274_v21 = vld [vmem:[#allocation8 + $0x10] sm:$0xff] }
  0x4d   :  { %460 = vmatpush3.bf16.msra.mxu0 %v457_v3  ;;  %v469_v13 = vpack.c.bf16 %v273_v12, %v272_v11  ;;  %v403_v14 = vld [vmem:[%s761_s2] ss:$0 sm:$0xff]  ;;  %v275_v22 = vld [vmem:[#allocation8 + $0x18] sm:$0xff] }
  0x4e   :  { %462 = vmatprep.subr.bf16.mxu1 %v461_v6  ;;  %v473_v23 = vpack.c.bf16 %v275_v22, %v274_v21  ;;  %v406_v24 = vld [vmem:[%s763_s4] ss:$0 sm:$0xff]  ;;  %s616_s4 = smov [#allocation10]  }
  0x4f   :  { %464 = vmatpush3.bf16.msra.mxu1 %v461_v6  ;;  %470 = vmatprep.subr.bf16.mxu0 %v469_v13  ;;  %v409_v31 = vld [vmem:[%s765_s6] ss:$0 sm:$0xff]  ;;  %s389_s6 = sshll.u32 %s616_s4, 4  ;;  %s390_s6 = int_to_ptr.vmem [resolvable:$true] %s389_s6 }
  0x50   :  { %433 = vmatmul.mubr.msk.f32.vlgmr.msra.gmra.mrb[0].mxu0 %vm93_vm0, %v83_v7  ;;  %466 = vmatprep.subr.bf16.mxu1 %v465_v10  ;;  %s580_s8 = scalar_lea.vmem %s390_s6, 256  ;;  %p585_p5 = scmp.lt.s32.totalorder %s390_s6, %s390_s6 }
  0x51   :  { %472 = vmatpush3.bf16.msra.mxu0 %v469_v13  ;;  %p581_p4 = scmp.ne.s32.totalorder %s390_s6, %s580_s8  ;;  %p586_p6 = scmp.lt.s32.totalorder %s580_s8, %s580_s8 }
  0x52   :  { %474 = vmatprep.subr.bf16.mxu0 %v473_v23 }
  0x53   :  { %468 = vmatpush3.bf16.msra.mxu1 %v465_v10  ;;  %p587_p7 = por %p586_p6, %p585_p5 }
  0x55   :  { %476 = vmatpush3.bf16.msra.mxu0 %v473_v23  ;;  %p588_p8 = pnand %p587_p7, %p581_p4 }
 0x123   :  { %v434_v15 = vpop.f32.mrb[0].mxu0 }
 0x124   :  { %v172_v16 = vadd.f32 %v434_v15, %v403_v14  ;;  %v166_v17 = vpop.f32.mrb[1].mxu0 }
 0x125   :  { %v167_v18 = vadd.f32 %v403_v14, %v166_v17 }
 0x126   :  { %v176_v20 = vmax.f32 %v172_v16, 0.0 }
 0x127   :  { %v175_v19 = vmax.f32 %v167_v18, 0.0 }
 0x129   :  { %443 = vmatprep.mubr.msk.f32.mxu1 %vm188_vm1, %v175_v19 }
 0x12a   :  { %444 = vmatmul.mubr.msk.f32.vlgmr.msra.gmra.mrb[0].mxu1 %vm188_vm1, %v176_v20 }
 0x1fd   :  { %v445_v25 = vpop.f32.mrb[0].mxu1 }
 0x1fe   :  { %v267_v26 = vadd.f32 %v445_v25, %v406_v24  ;;  %v261_v27 = vpop.f32.mrb[1].mxu1 }
 0x1ff   :  { %v262_v28 = vadd.f32 %v406_v24, %v261_v27 }
 0x200   :  { %v271_v30 = vmax.f32 %v267_v26, 0.0 }
 0x201   :  { %v270_v29 = vmax.f32 %v262_v28, 0.0 }
 0x203   :  { %454 = vmatprep.mubr.msk.f32.mxu0 %vm188_vm1, %v270_v29 }
 0x204   :  { %455 = vmatmul.mubr.msk.f32.vlgmr.msra.gmra.mrb[2].mxu0 %vm188_vm1, %v271_v30 }
 0x2d7   :  { %v456_v32 = vpop.f32.mrb[2].mxu0 }
 0x2d8   :  { %v355_v33 = vpop.f32.mrb[3].mxu0  ;;  %v361_v35 = vadd.f32 %v456_v32, %v409_v31 }
 0x2d9   :  { %v356_v34 = vadd.f32 %v409_v31, %v355_v33 }
 0x2db   :  { %364 = vmax.xlane.f32.xlu0 %v356_v34 }
 0x2df   :  { %366 = vmax.xlane.f32.xlu0 %v361_v35 }
 0x368   :  { %v365_v36 = vpop.xlane.xlu0 %364 }
 0x369   :  { %v368_v37 = vsub.f32 %v356_v34, %v365_v36 }
 0x36b   :  { %v370_v38 = vmul.f32 1.442695, %v368_v37 }
 0x36c   :  { %v367_v39 = vpop.xlane.xlu0 %366 }
 0x36d   :  { %484 = vpow2.f32 %v370_v38  ;;  %v369_v40 = vsub.f32 %v361_v35, %v367_v39 }
 0x36f   :  { %v372_v41 = vmul.f32 1.442695, %v369_v40 }
 0x371   :  { %486 = vpow2.f32 %v372_v41 }
 0x377   :  { %v485_v42 = vpop.eup %484 }
 0x378   :  { %374 = vadd.xlane.f32.xlu1 %v485_v42 }
 0x37b   :  { %v487_v43 = vpop.eup %486 }
 0x37c   :  { %376 = vadd.xlane.f32.xlu1 %v487_v43 }
 0x405   :  { %v375_v44 = vpop.xlane.xlu1 %374 }
 0x406   :  { %488 = vrcp.f32 %v375_v44 }
 0x409   :  { %v377_v45 = vpop.xlane.xlu1 %376 }
 0x40a   :  { %490 = vrcp.f32 %v377_v45 }
 0x410   :  { %v489_v46 = vpop.eup %488 }
 0x411   :  { %v379_v47 = vmul.f32 %v489_v46, %v485_v42 }
 0x413   :  { %382 = vst [vmem:[#allocation10] sm:$0xff] %v379_v47 }
 0x414   :  { %v491_v48 = vpop.eup %490 }
 0x415   :  { %v381_v49 = vmul.f32 %v491_v48, %v487_v43 }
 0x417   :  { %383 = vst [vmem:[#allocation10 + $0x8] sm:$0xff] %v381_v49 }
 0x418   :  { %591 = shalt.err (!%p588_p8)
}
 0x419   :  { %s592_s11 = scalar_lea.hbm %s766_s7, 256 }
 0x41a   :  { %p593_p9 = scmp.ne.s32.totalorder %s766_s7, %s592_s11  ;;  %p596_p10 = scmp.lt.u32.totalorder %s592_s11, %s766_s7 }
 0x41c   :  { %p598_p11 = pnand %p596_p10, %p593_p9 }
 0x41e   :  { %601 = shalt.err (!%p598_p11)
}
 0x41f   :  { %395 = dma.vmem_to_hbm [thread:$0]  %s390_s6, 256, %s766_s7, [#allocation4], %s612_s13, %s612_s13, %s613_s14  }
 0x420   :  { %608 = dma.done.wait [#allocation4], 256  }
 0x421   :  { %609 = vsyncadd [#allocation4], 4294967040 }
 0x422   :  { %399 = vsyncpa [#allocation3], 1 }
 0x423   :  { %400 = vsyncpa [#allocation6], 1 }
 0x424   :  { %401 = vsyncpa [#allocation9], 1 }
 0x425   :  { %402 = vsyncpa [#allocation4], 1 }

</bundles_post_ra>
